<compile_context>
chip_gen: v6e
topology: v6e:2x2x1
jax: 0.10.0
libtpu: 0.0.40
codegen_flags: <defaults>
</compile_context>

<pallas_src>
import math
import functools

import jax
import jax.numpy as jnp
from jax import lax
from jax.experimental import pallas as pl
from jax.experimental.pallas import tpu as pltpu


def _round_up(x: int, m: int) -> int:
    return (x + m - 1) // m * m


# ---------------------------------------------------------------------------
# LM prediction head kernel: dense -> gelu(erf) -> LayerNorm -> folded decoder
# ---------------------------------------------------------------------------
def _lm_head_kernel(x_ref, w1_ref, b1_ref, w2_ref, b2_ref, out_ref):
    # Activation tile (TILE_N, H).  bf16 feeds the MXU; accumulate in f32.
    x = x_ref[...]
    if x.dtype != jnp.bfloat16:
        x = x.astype(jnp.bfloat16)
    h = jnp.dot(x, w1_ref[...], preferred_element_type=jnp.float32) + b1_ref[...]

    # Exact GELU (erf-based), matching torch.nn.functional.gelu default (f32).
    h = 0.5 * h * (1.0 + lax.erf(h * (1.0 / math.sqrt(2.0))))

    # LayerNorm over last dim, eps = 1e-12 (HF BERT default), stats in f32.
    # gamma/beta are folded into w2/b2 at prepare_params time.
    mean = jnp.mean(h, axis=-1, keepdims=True)
    var = jnp.mean((h - mean) * (h - mean), axis=-1, keepdims=True)
    h = (h - mean) * lax.rsqrt(var + 1e-12)

    # Decoder: lane-dense (TILE_N, V_pad) output, bf16 inputs, f32 accumulate.
    out_ref[...] = (
        jnp.dot(h.astype(jnp.bfloat16), w2_ref[...],
                preferred_element_type=jnp.float32)
        + b2_ref[...]
    )


def lm_prediction_head(seq_flat, w1_bf16, b1, w2_bf16, b2, *, tile_n=512):
    """seq_flat: (N, H) f32 or bf16.  w1_bf16: (H, H) bf16.
    w2_bf16: (H, V_pad) bf16 (gamma-folded).  b2: (1, V_pad) f32 (beta-folded).

    Returns (N, V_pad) f32 logits (caller slices off the vocab padding).
    """
    N, H = seq_flat.shape
    Vp = w2_bf16.shape[1]

    # Sublane-aligned tile; when N is small, shrink so the grid has >= 2 steps
    # (v7x has 2 TensorCores -> a grid of 1 would idle a whole core).
    tile_n = min(tile_n, max(8, _round_up(pl.cdiv(N, 2), 8)))
    grid = (pl.cdiv(N, tile_n),)

    # Scheduling hint so XLA can overlap the tiny pooled-head matmuls.
    flops = 2 * N * H * (H + Vp)
    bytes_accessed = (N * H * seq_flat.dtype.itemsize   # activation read
                      + N * Vp * 4                      # logits writeback
                      + H * (H + Vp) * 2                # bf16 weights (once)
                      + (H + Vp) * 4)                   # biases

    # NOTE: if N % tile_n != 0, the ragged last block may read garbage rows;
    # LayerNorm can turn those into NaN, but Pallas masks the partial output
    # block on writeback so valid rows are unaffected.
    out = pl.pallas_call(
        _lm_head_kernel,
        out_shape=jax.ShapeDtypeStruct((N, Vp), jnp.float32),
        grid_spec=pltpu.PrefetchScalarGridSpec(
            num_scalar_prefetch=0,
            grid=grid,
            in_specs=[
                # activation tile: streamed / double-buffered over the grid
                pl.BlockSpec((tile_n, H), lambda i: (i, 0)),
                # weights & biases: constant index_map -> resident across steps
                pl.BlockSpec((H, H), lambda i: (0, 0)),
                pl.BlockSpec((1, H), lambda i: (0, 0)),
                pl.BlockSpec((H, Vp), lambda i: (0, 0)),
                pl.BlockSpec((1, Vp), lambda i: (0, 0)),
            ],
            out_specs=pl.BlockSpec((tile_n, Vp), lambda i: (i, 0)),
        ),
        compiler_params=pltpu.CompilerParams(
            dimension_semantics=("parallel",)),
        cost_estimate=pl.CostEstimate(
            flops=flops, transcendentals=N * H, bytes_accessed=bytes_accessed),
    )(seq_flat, w1_bf16, b1, w2_bf16, b2)

    return out


# ---------------------------------------------------------------------------
# Parameter preparation (one-time): bf16 cast, vocab lane-padding, LN folding.
# ---------------------------------------------------------------------------
def prepare_params(params):
    """Returns (prepared_param_dict_of_arrays, vocab_size)."""
    H, V = params["dec_w"].shape
    Vp = _round_up(V, 128)

    dec_w_pad = jnp.pad(params["dec_w"], ((0, 0), (0, Vp - V)))      # (H, Vp)
    dec_b_pad = jnp.pad(params["dec_b"], ((0, 0), (0, Vp - V)))      # (1, Vp)
    gamma = params["ln_gamma"]                                        # (1, H)
    beta = params["ln_beta"]                                          # (1, H)

    # Fold LayerNorm affine into the decoder (in f32, before the bf16 cast):
    #   (norm(h)*gamma + beta) @ W2 + b2 == norm(h) @ (diag(gamma)@W2) + (beta@W2 + b2)
    w2_fold = gamma[0][:, None] * dec_w_pad                           # (H, Vp)
    b2_fold = beta @ dec_w_pad + dec_b_pad                            # (1, Vp)

    prepared = {
        "dense_w_bf16": params["dense_w"].astype(jnp.bfloat16),
        "dense_b": params["dense_b"],
        "dec_w_fold_bf16": w2_fold.astype(jnp.bfloat16),
        "dec_b_fold": b2_fold,
        "species_w": params["species_w"], "species_b": params["species_b"],
        "chain_w": params["chain_w"], "chain_b": params["chain_b"],
        "graft_w": params["graft_w"], "graft_b": params["graft_b"],
    }
    return prepared, V


# ---------------------------------------------------------------------------
# Forward (mirrors AntiBERTyHeads.forward).  vocab_size is static.
# ---------------------------------------------------------------------------
@functools.partial(jax.jit, static_argnames=("vocab_size",))
def antiberty_heads_forward(sequence_output, pooled_output, prepared, *,
                            vocab_size):
    B, S, H = sequence_output.shape

    seq_flat = sequence_output.reshape(B * S, H)
    pred_flat = lm_prediction_head(
        seq_flat,
        prepared["dense_w_bf16"], prepared["dense_b"],
        prepared["dec_w_fold_bf16"], prepared["dec_b_fold"],
    )
    # Static slice of the (lane-padded) vocab back to V, then reshape.
    prediction_scores = pred_flat[:, :vocab_size].reshape(B, S, vocab_size)

    # Pooled classifiers: a few thousand FLOPs each -> plain XLA (a pallas_call
    # launch + DMA setup would dominate the compute on every TPU generation).
    species_score = pooled_output @ prepared["species_w"] + prepared["species_b"][0]
    chain_score = pooled_output @ prepared["chain_w"] + prepared["chain_b"][0]
    graft_score = pooled_output @ prepared["graft_w"] + prepared["graft_b"][0]

    return prediction_scores, species_score, chain_score, graft_score


# ---------------------------------------------------------------------------
# Deterministic parameter init (synthetic; shapes from the module __init__)
# ---------------------------------------------------------------------------
def init_params(key, hidden_size, vocab_size):
    ks = jax.random.split(key, 8)
    std = 0.02
    return {
        # BertPredictionHeadTransform.dense: Linear(H, H)
        "dense_w": jax.random.normal(ks[0], (hidden_size, hidden_size), jnp.float32) * std,
        "dense_b": jax.random.normal(ks[1], (1, hidden_size), jnp.float32) * std,
        # LayerNorm(H)
        "ln_gamma": jnp.ones((1, hidden_size), jnp.float32),
        "ln_beta": jnp.zeros((1, hidden_size), jnp.float32),
        # decoder: Linear(H, V) + separate bias (init zeros in PyTorch)
        "dec_w": jax.random.normal(ks[2], (hidden_size, vocab_size), jnp.float32) * std,
        "dec_b": jnp.zeros((1, vocab_size), jnp.float32),
        # species / chain / graft classifiers
        "species_w": jax.random.normal(ks[3], (hidden_size, 6), jnp.float32) * std,
        "species_b": jax.random.normal(ks[4], (1, 6), jnp.float32) * std,
        "chain_w": jax.random.normal(ks[5], (hidden_size, 2), jnp.float32) * std,
        "chain_b": jax.random.normal(ks[6], (1, 2), jnp.float32) * std,
        "graft_w": jax.random.normal(ks[7], (hidden_size, 2), jnp.float32) * std,
        "graft_b": jnp.zeros((1, 2), jnp.float32),
    }


# Pure-JAX f32 reference for a correctness check (PyTorch semantics).
def _reference(sequence_output, pooled_output, params):
    h = sequence_output @ params["dense_w"] + params["dense_b"][0]
    h = 0.5 * h * (1.0 + lax.erf(h / math.sqrt(2.0)))
    mean = jnp.mean(h, axis=-1, keepdims=True)
    var = jnp.mean((h - mean) ** 2, axis=-1, keepdims=True)
    h = (h - mean) / jnp.sqrt(var + 1e-12)
    h = h * params["ln_gamma"][0] + params["ln_beta"][0]
    pred = h @ params["dec_w"] + params["dec_b"][0]
    sp = pooled_output @ params["species_w"] + params["species_b"][0]
    ch = pooled_output @ params["chain_w"] + params["chain_b"][0]
    gr = pooled_output @ params["graft_w"] + params["graft_b"][0]
    return pred, sp, ch, gr


if __name__ == "__main__":
    # Small shapes consistent with the module: batch=2, seq=8, hidden=32, vocab=25
    B, S, H, V = 2, 8, 32, 25
    key = jax.random.PRNGKey(0)
    k_seq, k_pool, k_params = jax.random.split(key, 3)

    sequence_output = jax.random.normal(k_seq, (B, S, H), jnp.float32)
    pooled_output = jax.random.normal(k_pool, (B, H), jnp.float32)
    params = init_params(k_params, H, V)
    prepared, vocab = prepare_params(params)  # one-time: bf16 cast + pad + LN fold

    outs = antiberty_heads_forward(sequence_output, pooled_output, prepared,
                                   vocab_size=vocab)
    outs = jax.block_until_ready(outs)

    refs = _reference(sequence_output, pooled_output, params)

    # LM head uses bf16 MXU inputs (f32 accumulation) -> looser tolerance.
    pred, sp, ch, gr = outs
    pred_ref, sp_ref, ch_ref, gr_ref = refs
    assert pred.shape == pred_ref.shape, (pred.shape, pred_ref.shape)
    assert jnp.allclose(pred, pred_ref, atol=5e-2, rtol=5e-2)
    # Pooled classifiers are pure f32 XLA -> tight tolerance.
    for o, r in ((sp, sp_ref), (ch, ch_ref), (gr, gr_ref)):
        assert o.shape == r.shape, (o.shape, r.shape)
        assert jnp.allclose(o, r, atol=1e-5, rtol=1e-5)

    print("KERNEL_OK")
</pallas_src>

<mosaic_0001>
module attributes {stable_mosaic.version = 11 : i64} {
  func.func @_lm_head_kernel(%arg0: i32, %arg1: memref<8x32xf32, #tpu.memory_space<vmem>>, %arg2: memref<32x32xbf16, #tpu.memory_space<vmem>>, %arg3: memref<1x32xf32, #tpu.memory_space<vmem>>, %arg4: memref<32x128xbf16, #tpu.memory_space<vmem>>, %arg5: memref<1x128xf32, #tpu.memory_space<vmem>>, %arg6: memref<8x128xf32, #tpu.memory_space<vmem>>) attributes {dimension_semantics = [#tpu.dimension_semantics<parallel>], iteration_bounds = array<i64: 2>, scalar_prefetch = 0 : i64, scratch_operands = 0 : i64, tpu.core_type = #tpu.core_type<tc>, window_params = [{transform_indices = @transform_0, window_bounds = array<i64: 8, 32>}, {pipeline_mode = #tpu.pipeline_mode<synchronous>, transform_indices = @transform_1, window_bounds = array<i64: 32, 32>}, {pipeline_mode = #tpu.pipeline_mode<synchronous>, transform_indices = @transform_2, window_bounds = array<i64: 1, 32>}, {pipeline_mode = #tpu.pipeline_mode<synchronous>, transform_indices = @transform_3, window_bounds = array<i64: 32, 128>}, {pipeline_mode = #tpu.pipeline_mode<synchronous>, transform_indices = @transform_4, window_bounds = array<i64: 1, 128>}, {transform_indices = @transform_5, window_bounds = array<i64: 8, 128>}]} {
    %c0 = arith.constant 0 : index
    %c0_0 = arith.constant 0 : index
    %0 = vector.load %arg1[%c0, %c0_0] : memref<8x32xf32, #tpu.memory_space<vmem>>, vector<8x32xf32>
    %1 = arith.truncf %0 : vector<8x32xf32> to vector<8x32xbf16>
    %c0_1 = arith.constant 0 : index
    %c0_2 = arith.constant 0 : index
    %2 = vector.load %arg2[%c0_1, %c0_2] : memref<32x32xbf16, #tpu.memory_space<vmem>>, vector<32x32xbf16>
    %cst = arith.constant dense<0.000000e+00> : vector<8x32xf32>
    %3 = tpu.matmul %1, %2, %cst {dimension_numbers = #tpu.dot_dimension_numbers<[1], [0], [0], [1], [0, 0, 1, 1], [], []>} : vector<8x32xbf16>, vector<32x32xbf16>, vector<8x32xf32> -> vector<8x32xf32>
    %c0_3 = arith.constant 0 : index
    %c0_4 = arith.constant 0 : index
    %4 = vector.load %arg3[%c0_3, %c0_4] : memref<1x32xf32, #tpu.memory_space<vmem>>, vector<1x32xf32>
    %5 = vector.broadcast %4 : vector<1x32xf32> to vector<8x32xf32>
    %6 = arith.addf %3, %5 : vector<8x32xf32>
    %cst_5 = arith.constant 5.000000e-01 : f32
    %7 = vector.broadcast %cst_5 : f32 to vector<8x32xf32>
    %8 = arith.mulf %7, %6 : vector<8x32xf32>
    %cst_6 = arith.constant 0.707106769 : f32
    %9 = vector.broadcast %cst_6 : f32 to vector<8x32xf32>
    %10 = arith.mulf %6, %9 : vector<8x32xf32>
    %11 = math.erf %10 : vector<8x32xf32>
    %cst_7 = arith.constant 1.000000e+00 : f32
    %12 = vector.broadcast %cst_7 : f32 to vector<8x32xf32>
    %13 = arith.addf %12, %11 : vector<8x32xf32>
    %14 = arith.mulf %8, %13 : vector<8x32xf32>
    %cst_8 = arith.constant dense<0.000000e+00> : vector<8xf32>
    %15 = vector.multi_reduction <add>, %14, %cst_8 [1] : vector<8x32xf32> to vector<8xf32>
    %16 = vector.shape_cast %15 : vector<8xf32> to vector<8x1xf32>
    %cst_9 = arith.constant 3.200000e+01 : f32
    %17 = vector.broadcast %cst_9 : f32 to vector<8x1xf32>
    %18 = arith.divf %16, %17 : vector<8x1xf32>
    %19 = vector.broadcast %18 : vector<8x1xf32> to vector<8x32xf32>
    %20 = arith.subf %14, %19 : vector<8x32xf32>
    %21 = vector.broadcast %18 : vector<8x1xf32> to vector<8x32xf32>
    %22 = arith.subf %14, %21 : vector<8x32xf32>
    %23 = arith.mulf %20, %22 : vector<8x32xf32>
    %cst_10 = arith.constant dense<0.000000e+00> : vector<8xf32>
    %24 = vector.multi_reduction <add>, %23, %cst_10 [1] : vector<8x32xf32> to vector<8xf32>
    %25 = vector.shape_cast %24 : vector<8xf32> to vector<8x1xf32>
    %cst_11 = arith.constant 3.200000e+01 : f32
    %26 = vector.broadcast %cst_11 : f32 to vector<8x1xf32>
    %27 = arith.divf %25, %26 : vector<8x1xf32>
    %28 = vector.broadcast %18 : vector<8x1xf32> to vector<8x32xf32>
    %29 = arith.subf %14, %28 : vector<8x32xf32>
    %cst_12 = arith.constant 9.99999996E-13 : f32
    %30 = vector.broadcast %cst_12 : f32 to vector<8x1xf32>
    %31 = arith.addf %27, %30 : vector<8x1xf32>
    %32 = math.rsqrt %31 : vector<8x1xf32>
    %33 = vector.broadcast %32 : vector<8x1xf32> to vector<8x32xf32>
    %34 = arith.mulf %29, %33 : vector<8x32xf32>
    %35 = arith.truncf %34 : vector<8x32xf32> to vector<8x32xbf16>
    %c0_13 = arith.constant 0 : index
    %c0_14 = arith.constant 0 : index
    %36 = vector.load %arg4[%c0_13, %c0_14] : memref<32x128xbf16, #tpu.memory_space<vmem>>, vector<32x128xbf16>
    %cst_15 = arith.constant dense<0.000000e+00> : vector<8x128xf32>
    %37 = tpu.matmul %35, %36, %cst_15 {dimension_numbers = #tpu.dot_dimension_numbers<[1], [0], [0], [1], [0, 0, 1, 1], [], []>} : vector<8x32xbf16>, vector<32x128xbf16>, vector<8x128xf32> -> vector<8x128xf32>
    %c0_16 = arith.constant 0 : index
    %c0_17 = arith.constant 0 : index
    %38 = vector.load %arg5[%c0_16, %c0_17] : memref<1x128xf32, #tpu.memory_space<vmem>>, vector<1x128xf32>
    %39 = vector.broadcast %38 : vector<1x128xf32> to vector<8x128xf32>
    %40 = arith.addf %37, %39 : vector<8x128xf32>
    %c0_18 = arith.constant 0 : index
    %c0_19 = arith.constant 0 : index
    %41 = vector.load %arg6[%c0_18, %c0_19] : memref<8x128xf32, #tpu.memory_space<vmem>>, vector<8x128xf32>
    tpu.vector_store %arg6[%c0_18, %c0_19], %40 {strides = array<i32>} : memref<8x128xf32, #tpu.memory_space<vmem>>, vector<8x128xf32>,
    return
  }
  func.func @transform_0(%arg0: i32) -> (i32, i32) {
    %c0_i32 = arith.constant 0 : i32
    %c0_i32_0 = arith.constant 0 : i32
    return %arg0, %c0_i32 : i32, i32
  }
  func.func @transform_1(%arg0: i32) -> (i32, i32) {
    %c0_i32 = arith.constant 0 : i32
    %c0_i32_0 = arith.constant 0 : i32
    %c0_i32_1 = arith.constant 0 : i32
    return %c0_i32, %c0_i32_0 : i32, i32
  }
  func.func @transform_2(%arg0: i32) -> (i32, i32) {
    %c0_i32 = arith.constant 0 : i32
    %c0_i32_0 = arith.constant 0 : i32
    %c0_i32_1 = arith.constant 0 : i32
    return %c0_i32, %c0_i32_0 : i32, i32
  }
  func.func @transform_3(%arg0: i32) -> (i32, i32) {
    %c0_i32 = arith.constant 0 : i32
    %c0_i32_0 = arith.constant 0 : i32
    %c0_i32_1 = arith.constant 0 : i32
    return %c0_i32, %c0_i32_0 : i32, i32
  }
  func.func @transform_4(%arg0: i32) -> (i32, i32) {
    %c0_i32 = arith.constant 0 : i32
    %c0_i32_0 = arith.constant 0 : i32
    %c0_i32_1 = arith.constant 0 : i32
    return %c0_i32, %c0_i32_0 : i32, i32
  }
  func.func @transform_5(%arg0: i32) -> (i32, i32) {
    %c0_i32 = arith.constant 0 : i32
    %c0_i32_0 = arith.constant 0 : i32
    return %arg0, %c0_i32 : i32, i32
  }
}

</mosaic_0001>

<bundles_post_ra>
// kernel: antiberty_heads_forward.1
= control target key start
LH: loop header
LB: loop body
LE: loop exit
PB: predicated region body
PF: predicated region fallthrough
CT: control target
= control target key end

     0   :  { %10 = vsyncpa [#allocation3], 0  ;;  %s749_s0 = inlined_call_operand.vmem [shape: f32[16,32], index: 0, kind: input, shape index: {}]   ;;  %s750_s1 = inlined_call_operand.hbm [shape: bf16[32,32], index: 1, kind: input, shape index: {}]   ;;  %s751_s2 = inlined_call_operand.vmem [shape: f32[1,32], index: 2, kind: input, shape index: {}]   ;;  %s752_s3 = inlined_call_operand.hbm [shape: bf16[32,128], index: 3, kind: input, shape index: {}]   ;;  %s753_s4 = inlined_call_operand.vmem [shape: f32[1,128], index: 4, kind: input, shape index: {}]   ;;  %s754_s5 = inlined_call_operand.vmem [shape: f32[16,128], index: 5, kind: output, shape index: {}]  }
   0x1   :  { %11 = vsyncpa [#allocation5], 0  ;;  %s670_s18 = smov 0  }
   0x2 LB: > { %s676_s19 = sadd.s32 4294967295, %s632_s18   ;;  %p484_p0 = scmp.ge.s32.totalorder %s632_s18, 1  ;;  %s632_s18 = sphi %s670_s18, %s17_s18  }
   0x3   : > { %p158_p1 = scmp.lt.s32.totalorder %s632_s18, 3  ;;  %s634_s20 = smov [#allocation2]  }
   0x4   : > { %s170_s21 = sshll.u32 %s634_s20, 4  ;;  %p540_p3 = scmp.eq.s32.totalorder %s676_s19, 0  ;;  %s171_s21 = int_to_ptr.vmem [resolvable:$true] %s170_s21 }
   0x5   : > { %p680_p2 = pnand %p484_p0, %p158_p1  ;;  %s635_s23 = smov [#allocation4]  }
   0x6   : > { %s186_s24 = sshll.u32 %s635_s23, 4  ;;  %s577_s26 = scalar_lea.vmem %s171_s21, 256  ;;  %s187_s24 = int_to_ptr.vmem [resolvable:$true] %s186_s24 }
   0x7   : > { %p533_p4 = pneg %p680_p2  ;;  %p578_p7 = scmp.ne.s32.totalorder %s171_s21, %s577_s26 }
   0x8   : > { %p585_p10 = scmp.lt.s32.totalorder %s171_s21, %s171_s21  ;;  %p586_p11 = scmp.lt.s32.totalorder %s577_s26, %s577_s26 }
   0x9   : > { %p689_p5 = pnand %p540_p3, %p533_p4 }
   0xa   : > { %p587_p12 = por %p586_p11, %p585_p10 }
   0xb   : > { %p568_p6 = pneg %p689_p5 }
   0xd   : > { %p580_p8 = pnand %p578_p7, %p568_p6 }
   0xf   : > { %p581_p9 = pneg %p580_p8 }
  0x11   : > { %p588_p13 = pnand %p587_p12, %p581_p9 }
  0x13   : > { %591 = shalt.err (!%p588_p13)
}
  0x14   : > { %s636_s27 = smov 64   ;;  %s637_s28 = smov 4  }
  0x15   : > { %536 = dma.hbm_to_vmem [thread:$0]  (!%p689_p5), %s750_s1, 256, %s171_s21, [#allocation3], %s636_s27, %s636_s27, %s637_s28  }
  0x16   : > { %s603_s6 = scalar_lea.vmem %s187_s24, 256  ;;  %p611_p7 = scmp.lt.s32.totalorder %s187_s24, %s187_s24 }
  0x17   : > { %p604_p0 = scmp.ne.s32.totalorder %s187_s24, %s603_s6  ;;  %p612_p8 = scmp.lt.s32.totalorder %s603_s6, %s603_s6 }
  0x19   : > { %p606_p1 = pnand %p604_p0, %p568_p6  ;;  %p613_p10 = por %p612_p8, %p611_p7 }
  0x1b   : > { %p607_p4 = pneg %p606_p1 }
  0x1d   : > { %p614_p9 = pnand %p613_p10, %p607_p4 }
  0x1f   : > { %617 = shalt.err (!%p614_p9)
}
  0x20   : > { %539 = dma.hbm_to_vmem [thread:$0]  (!%p689_p5), %s752_s3, 256, %s187_s24, [#allocation5], %s636_s27, %s636_s27, %s637_s28  }
  0x21   : > { %212 = sbr.rel (%p680_p2) target bundleno = 771 (0x303), region = 40 }
  0x26   : > { %623 = dma.done.wait (%p540_p3), [#allocation3], 256  }
  0x27   : > { %625 = vsyncadd (%p540_p3), [#allocation3], 4294967040 }
  0x28   : > { %627 = dma.done.wait (%p540_p3), [#allocation5], 256  }
  0x29   : > { %629 = vsyncadd (%p540_p3), [#allocation5], 4294967040  ;;  %p242_p6 = scmp.lt.s32.totalorder %s676_s19, 1  ;;  %v638_v0 = vmov 0.0   ;;  %vm639_vm0 = vmmov 0   ;;  %v558_v1 = vld [vmem:[#allocation2 + $0x8] sm:$0xff]  }
  0x2a   : > { %509 = vmatprep.subr.bf16.mxu0 %v638_v0  ;;  %513 = vmatprep.mubr.msk.bf16.mxu0 %vm639_vm0, %v638_v0  ;;  %v559_v2 = vld [vmem:[#allocation2] sm:$0xff]   ;;  %vm276_vm1 = vcmask 261120   ;;  %v560_v22 = vld [vmem:[#allocation4 + $0x8] sm:$0xff]   ;;  %v561_v23 = vld [vmem:[#allocation4] sm:$0xff]  }
  0x2b   : > { %s758_s19 = smov (!%p242_p6, %s676_s19), 1  ;;  %517 = vmatprep.subr.bf16.mxu1 %v638_v0  ;;  %521 = vmatprep.mubr.msk.bf16.mxu1 %vm639_vm0, %v638_v0  ;;  %v493_v5 = vld [vmem:[%s751_s2] ss:$0 sm:$0xff] }
  0x2c   : > { %s491_s9 = sshll.u32 %s758_s19, 3  ;;  %510 = vmatpush3.bf16.msra.mxu0 %v558_v1  ;;  %518 = vmatpush3.bf16.msra.mxu1 %v560_v22  ;;  %v497_v30 = vld [vmem:[%s753_s4] ss:$0 sm:$0xff] }
  0x2d   : > { %s245_s12 = scalar_lea.vmem %s749_s0, %s491_s9  ;;  %511 = vmatprep.subr.bf16.mxu0 %v638_v0  ;;  %519 = vmatprep.subr.bf16.mxu1 %v638_v0  ;;  %s249_s21 = scalar_lea.vmem %s754_s5, %s491_s9 }
  0x2e   : > { %v251_v3 = vld [vmem:[%s245_s12] sm:$0xff] }
  0x2f   : > { %v252_v4 = vpack.c.bf16 %v251_v3, %v251_v3 }
  0x30   : > { %512 = vmatpush3.bf16.msra.mxu0 %v559_v2  ;;  %520 = vmatpush3.bf16.msra.mxu1 %v561_v23 }
  0x33   : > { %514 = vmatmul.mubr.msk.bf16.vlgmr.msra.gmra.mxu0 %vm276_vm1, %v252_v4 }
  0xf3   : > { %v314_v6 = vpop.f32.mrf.mxu0 }
  0xf4   : > { %v315_v7 = vadd.f32 %v493_v5, %v314_v6 }
  0xf5   : > { %v515_v8 = vpop.f32.mrf.mxu0 }
  0xf6   : > { %v321_v9 = vmul.f32 0.70710677, %v315_v7  ;;  %v320_v13 = vmul.f32 0.5, %v315_v7 }
  0xf7   : > { %v317_v10 = vpop.f32.mrf.mxu0 }
  0xf8   : > { %562 = verf.f32 %v321_v9 }
  0xf9   : > { %v516_v11 = vpop.f32.mrf.mxu0 }
 0x105   : > { %v563_v12 = vpop.eup %562 }
 0x106   : > { %v323_v14 = vadd.f32 1.0, %v563_v12 }
 0x108   : > { %v324_v15 = vmul.f32 %v323_v14, %v320_v13 }
 0x10a   : > { %v325_v16 = vsel %vm276_vm1, %v324_v15, 0.0 }
 0x10b   : > { %326 = vadd.xlane.f32.xlu0 %v325_v16 }
 0x194   : > { %v327_v17 = vpop.xlane.xlu0 %326 }
 0x195   : > { %v329_v18 = vmul.f32 0.03125, %v327_v17 }
 0x197   : > { %v330_v19 = vsub.f32 %v324_v15, %v329_v18 }
 0x199   : > { %v331_v20 = vmul.f32 %v330_v19, %v330_v19 }
 0x19b   : > { %v332_v21 = vsel %vm276_vm1, %v331_v20, 0.0 }
 0x19c   : > { %333 = vadd.xlane.f32.xlu0 %v332_v21 }
 0x225   : > { %v334_v24 = vpop.xlane.xlu0 %333 }
 0x226   : > { %v335_v25 = vmul.f32 0.03125, %v334_v24 }
 0x228   : > { %v336_v26 = vadd.f32 1e-12, %v335_v25 }
 0x22a   : > { %564 = vrsqrt.f32 %v336_v26 }
 0x237   : > { %v565_v27 = vpop.eup %564 }
 0x238   : > { %v338_v28 = vmul.f32 %v565_v27, %v330_v19 }
 0x23a   : > { %v339_v29 = vpack.c.bf16 %v338_v28, %v338_v28 }
 0x23c   : > { %522 = vmatmul.mubr.msk.bf16.vlgmr.msra.gmra.mxu1 %vm276_vm1, %v339_v29 }
 0x2fc   : > { %v400_v31 = vpop.f32.mrf.mxu1 }
 0x2fd   : > { %v401_v32 = vadd.f32 %v497_v30, %v400_v31 }
 0x2fe   : > { %v523_v33 = vpop.f32.mrf.mxu1 }
 0x2ff   : > { %406 = vst [vmem:[%s249_s21] sm:$0xff] %v401_v32 }
 0x300   : > { %v403_v34 = vpop.f32.mrf.mxu1 }
 0x302   : > { %v524_v35 = vpop.f32.mrf.mxu1 }
 0x303 PF: > { %s17_s18 = sadd.s32 1, %s632_s18  }
 0x304   : > { %p14_p2 = scmp.ge.s32.totalorder %s17_s18, 4  }
 0x306   :  { %16 = sbr.rel (!%p14_p2) target bundleno = 2 (0x2), region = 79 }
 0x30b   :  { %426 = vsyncpa [#allocation3], 1 }
 0x30c   :  { %428 = vsyncpa [#allocation3 + $0x1], 1 }
 0x30d   :  { %429 = vsyncpa [#allocation5], 1 }

</bundles_post_ra>
